<compile_context>
chip_gen: v6e
topology: v6e:2x2x1
jax: 0.10.0
libtpu: 0.0.40
codegen_flags: <defaults>
</compile_context>

<pallas_src>
import jax
import jax.numpy as jnp
from jax.experimental import pallas as pl
from jax.experimental.pallas import tpu as pltpu

B, C, H, W = 2, 4, 16, 16     # batch, in_channels, spatial
HID, OUT = 32, 16             # hid_channels, out_channels

# Packed-parameter slab layout: (P_ROWS, LANES) f32, every sub-block starts on an
# 8-row (sublane-tile) boundary, lanes start at 0; unused entries are zero.
LANES = 128
ROW_W1 = 0            # rows [0, C)          lanes [0, HID)   : linear_1.weight^T
ROW_B1 = 8            # row  8               lanes [0, HID)   : linear_1.bias
ROW_W2 = 16           # rows [16, 16+HID)    lanes [0, HID)   : linear_2.weight^T
ROW_B2 = 48           # row  48              lanes [0, HID)   : linear_2.bias
ROW_WL = 56           # rows [56, 56+HID)    lanes [0, OUT)   : last_linear.weight^T
P_ROWS = 88           # 11 sublane tiles, 88*128*4 B ≈ 44 KiB


def pack_params(w1, b1, w2, b2, wl):
    """Pack all parameters into one 128-lane, 8-row-aligned f32 slab (done once)."""
    p = jnp.zeros((P_ROWS, LANES), jnp.float32)
    p = p.at[ROW_W1:ROW_W1 + C, :HID].set(w1)
    p = p.at[ROW_B1, :HID].set(b1)
    p = p.at[ROW_W2:ROW_W2 + HID, :HID].set(w2)
    p = p.at[ROW_B2, :HID].set(b2)
    p = p.at[ROW_WL:ROW_WL + HID, :OUT].set(wl)   # lanes >= OUT stay zero (lane padding)
    return p


def neck_kernel(x_ref, p_ref, o_ref):
    # x_ref: (B, C, H*W) f32 lane-dense slab
    # p_ref: (P_ROWS, 128) f32 packed parameters
    # o_ref: (B, 128) f32 lane-padded output (first OUT lanes valid, rest zero)

    # --- with_avg_pool: AdaptiveAvgPool2d((1,1)) then .view(B, -1) -> (B, C) ---
    pooled = jnp.mean(x_ref[...], axis=-1)                      # single lane reduce

    # Static slices of the packed parameter slab (8-row / lane-0 aligned).
    w1 = p_ref[ROW_W1:ROW_W1 + C, :HID]                         # (C, HID)
    b1 = p_ref[ROW_B1:ROW_B1 + 1, :HID]                         # (1, HID)
    w2 = p_ref[ROW_W2:ROW_W2 + HID, :HID]                       # (HID, HID)
    b2 = p_ref[ROW_B2:ROW_B2 + 1, :HID]                         # (1, HID)
    wl = p_ref[ROW_WL:ROW_WL + HID, :]                          # (HID, 128), zero-padded lanes

    # --- linear_1 (+ dropout == identity) + relu_1 ---
    h = jnp.dot(pooled, w1, preferred_element_type=jnp.float32) + b1
    h = jnp.maximum(h, 0.0)

    # --- linear_2 (+ dropout == identity) + relu_2 ---
    h = jnp.dot(h, w2, preferred_element_type=jnp.float32) + b2
    h = jnp.maximum(h, 0.0)

    # --- last_linear (bias=False because last_norm=True and norm=='') ---
    # wl is zero-padded to 128 lanes -> full-width, unmasked lane-dense store.
    o_ref[...] = jnp.dot(h, wl, preferred_element_type=jnp.float32)


def linear_norm_neck(x, packed_params):
    b, c, h, w = x.shape
    x_slab = x.reshape(b, c, h * w)           # contiguous reshape: lane-dense input slab
    out_padded = pl.pallas_call(
        neck_kernel,
        out_shape=jax.ShapeDtypeStruct((b, LANES), jnp.float32),
        # No grid: single invocation, whole arrays resident in VMEM, single-buffered
        # (no pipeline prologue/epilogue, no 2x double-buffer allocation).
        in_specs=[
            pl.BlockSpec(memory_space=pltpu.MemorySpace.VMEM),   # x slab
            pl.BlockSpec(memory_space=pltpu.MemorySpace.VMEM),   # packed params (1 DMA)
        ],
        out_specs=pl.BlockSpec(memory_space=pltpu.MemorySpace.VMEM),
    )(x_slab, packed_params)
    return out_padded[:, :OUT]


def reference(x, w1, b1, w2, b2, wl):
    pooled = jnp.mean(x, axis=(2, 3))
    h = jnp.maximum(pooled @ w1 + b1, 0.0)
    h = jnp.maximum(h @ w2 + b2, 0.0)
    return h @ wl


if __name__ == "__main__":
    key = jax.random.PRNGKey(0)
    kx, k1, kb1, k2, kb2, kl = jax.random.split(key, 6)

    # Deterministic synthetic parameters (shapes from module __init__).
    x = jax.random.normal(kx, (B, C, H, W), dtype=jnp.float32)
    w1 = jax.random.normal(k1, (C, HID), dtype=jnp.float32) * 0.1     # linear_1.weight^T
    b1 = jax.random.normal(kb1, (HID,), dtype=jnp.float32) * 0.1      # linear_1.bias
    w2 = jax.random.normal(k2, (HID, HID), dtype=jnp.float32) * 0.1   # linear_2.weight^T
    b2 = jax.random.normal(kb2, (HID,), dtype=jnp.float32) * 0.1      # linear_2.bias
    wl = jax.random.normal(kl, (HID, OUT), dtype=jnp.float32) * 0.1   # last_linear.weight^T (no bias)

    packed = pack_params(w1, b1, w2, b2, wl)    # one-time wrapper-side packing

    out = linear_norm_neck(x, packed)
    out = jax.block_until_ready(out)

    ref = reference(x, w1, b1, w2, b2, wl)
    assert out.shape == (B, OUT)
    assert jnp.allclose(out, ref, atol=1e-4, rtol=1e-4), "mismatch vs pure-JAX reference"

    print("KERNEL_OK")
</pallas_src>

<mosaic_0001>
module attributes {stable_mosaic.version = 11 : i64} {
  func.func @neck_kernel(%arg0: memref<2x4x256xf32, #tpu.memory_space<vmem>>, %arg1: memref<88x128xf32, #tpu.memory_space<vmem>>, %arg2: memref<2x128xf32, #tpu.memory_space<vmem>>) attributes {dimension_semantics = [], scalar_prefetch = 0 : i64, scratch_operands = 0 : i64, tpu.core_type = #tpu.core_type<tc>} {
    %c0 = arith.constant 0 : index
    %c0_0 = arith.constant 0 : index
    %c0_1 = arith.constant 0 : index
    %0 = vector.load %arg0[%c0, %c0_0, %c0_1] : memref<2x4x256xf32, #tpu.memory_space<vmem>>, vector<2x4x256xf32>
    %cst = arith.constant dense<0.000000e+00> : vector<2x4xf32>
    %1 = vector.multi_reduction <add>, %0, %cst [2] : vector<2x4x256xf32> to vector<2x4xf32>
    %cst_2 = arith.constant 2.560000e+02 : f32
    %2 = vector.broadcast %cst_2 : f32 to vector<2x4xf32>
    %3 = arith.divf %1, %2 : vector<2x4xf32>
    %c0_3 = arith.constant 0 : index
    %c0_4 = arith.constant 0 : index
    %4 = vector.load %arg1[%c0_3, %c0_4] : memref<88x128xf32, #tpu.memory_space<vmem>>, vector<4x32xf32>
    %c8 = arith.constant 8 : index
    %c0_5 = arith.constant 0 : index
    %5 = vector.load %arg1[%c8, %c0_5] : memref<88x128xf32, #tpu.memory_space<vmem>>, vector<1x32xf32>
    %c16 = arith.constant 16 : index
    %c0_6 = arith.constant 0 : index
    %6 = vector.load %arg1[%c16, %c0_6] : memref<88x128xf32, #tpu.memory_space<vmem>>, vector<32x32xf32>
    %c48 = arith.constant 48 : index
    %c0_7 = arith.constant 0 : index
    %7 = vector.load %arg1[%c48, %c0_7] : memref<88x128xf32, #tpu.memory_space<vmem>>, vector<1x32xf32>
    %c56 = arith.constant 56 : index
    %c0_8 = arith.constant 0 : index
    %8 = vector.load %arg1[%c56, %c0_8] : memref<88x128xf32, #tpu.memory_space<vmem>>, vector<32x128xf32>
    %cst_9 = arith.constant dense<0.000000e+00> : vector<2x32xf32>
    %9 = tpu.matmul %3, %4, %cst_9 {dimension_numbers = #tpu.dot_dimension_numbers<[1], [0], [0], [1], [0, 0, 1, 1], [], []>} : vector<2x4xf32>, vector<4x32xf32>, vector<2x32xf32> -> vector<2x32xf32>
    %10 = vector.broadcast %5 : vector<1x32xf32> to vector<2x32xf32>
    %11 = arith.addf %9, %10 : vector<2x32xf32>
    %cst_10 = arith.constant 0.000000e+00 : f32
    %12 = vector.broadcast %cst_10 : f32 to vector<2x32xf32>
    %13 = arith.maximumf %11, %12 : vector<2x32xf32>
    %cst_11 = arith.constant dense<0.000000e+00> : vector<2x32xf32>
    %14 = tpu.matmul %13, %6, %cst_11 {dimension_numbers = #tpu.dot_dimension_numbers<[1], [0], [0], [1], [0, 0, 1, 1], [], []>} : vector<2x32xf32>, vector<32x32xf32>, vector<2x32xf32> -> vector<2x32xf32>
    %15 = vector.broadcast %7 : vector<1x32xf32> to vector<2x32xf32>
    %16 = arith.addf %14, %15 : vector<2x32xf32>
    %cst_12 = arith.constant 0.000000e+00 : f32
    %17 = vector.broadcast %cst_12 : f32 to vector<2x32xf32>
    %18 = arith.maximumf %16, %17 : vector<2x32xf32>
    %cst_13 = arith.constant dense<0.000000e+00> : vector<2x128xf32>
    %19 = tpu.matmul %18, %8, %cst_13 {dimension_numbers = #tpu.dot_dimension_numbers<[1], [0], [0], [1], [0, 0, 1, 1], [], []>} : vector<2x32xf32>, vector<32x128xf32>, vector<2x128xf32> -> vector<2x128xf32>
    %c0_14 = arith.constant 0 : index
    %c0_15 = arith.constant 0 : index
    %20 = vector.load %arg2[%c0_14, %c0_15] : memref<2x128xf32, #tpu.memory_space<vmem>>, vector<2x128xf32>
    tpu.vector_store %arg2[%c0_14, %c0_15], %19 {strides = array<i32>} : memref<2x128xf32, #tpu.memory_space<vmem>>, vector<2x128xf32>,
    return
  }
}

</mosaic_0001>

<bundles_post_ra>
// kernel: tpu_custom_call.1
= control target key start
LH: loop header
LB: loop body
LE: loop exit
PB: predicated region body
PF: predicated region fallthrough
CT: control target
= control target key end

     0   :  { %7 = vsyncpa [#allocation3], 0  ;;  %s498_s0 = inlined_call_operand.hbm [shape: f32[2,4,256], index: 0, kind: input, shape index: {}]   ;;  %s499_s1 = inlined_call_operand.hbm [shape: f32[88,128], index: 1, kind: input, shape index: {}]   ;;  %s500_s2 = inlined_call_operand.hbm [shape: f32[2,128], index: 2, kind: output, shape index: {}]  }
   0x1   :  { %8 = vsyncpa [#allocation6], 0 }
   0x2   :  { %9 = vsyncpa [#allocation4], 0  ;;  %s457_s9 = smov [#allocation2]  }
   0x3   :  { %s15_s10 = sshll.u32 %s457_s9, 4  ;;  %s16_s10 = int_to_ptr.vmem [resolvable:$true] %s15_s10 }
   0x4   :  { %s399_s11 = scalar_lea.vmem %s16_s10, 256  ;;  %p404_p1 = scmp.lt.s32.totalorder %s16_s10, %s16_s10 }
   0x5   :  { %p400_p0 = scmp.ne.s32.totalorder %s16_s10, %s399_s11  ;;  %p405_p2 = scmp.lt.s32.totalorder %s399_s11, %s399_s11 }
   0x7   :  { %p406_p3 = por %p405_p2, %p404_p1 }
   0x9   :  { %p407_p4 = pnand %p406_p3, %p400_p0 }
   0xb   :  { %410 = shalt.err (!%p407_p4)
}
   0xc   :  { %s458_s12 = smov 128   ;;  %s459_s13 = smov 8  }
   0xd   :  { %21 = dma.hbm_to_vmem [thread:$0]  %s498_s0, 256, %s16_s10, [#allocation3], %s458_s12, %s458_s12, %s459_s13  }
   0xe   :  { %s460_s16 = smov [#allocation5]  }
   0xf   :  { %s27_s17 = sshll.u32 %s460_s16, 4  ;;  %s28_s17 = int_to_ptr.vmem [resolvable:$true] %s27_s17 }
  0x10   :  { %s419_s18 = scalar_lea.vmem %s28_s17, 1408  ;;  %p424_p6 = scmp.lt.s32.totalorder %s28_s17, %s28_s17 }
  0x11   :  { %p420_p5 = scmp.ne.s32.totalorder %s28_s17, %s419_s18  ;;  %p425_p7 = scmp.lt.s32.totalorder %s419_s18, %s419_s18 }
  0x13   :  { %p426_p8 = por %p425_p7, %p424_p6 }
  0x15   :  { %p427_p9 = pnand %p426_p8, %p420_p5 }
  0x17   :  { %430 = shalt.err (!%p427_p9)
}
  0x18   :  { %33 = dma.hbm_to_vmem [thread:$0]  %s499_s1, 1408, %s28_s17, [#allocation6], %s458_s12, %s458_s12, %s459_s13  }
  0x19   :  { %451 = dma.done.wait [#allocation3], 256  }
  0x1a   :  { %452 = vsyncadd [#allocation3], 4294967040 }
  0x1b   :  { %453 = dma.done.wait [#allocation6], 1408  }
  0x1c   :  { %454 = vsyncadd [#allocation6], 4294965888  ;;  %vm48_vm0 = vcmask 1043456   ;;  %v40_v0 = vld [vmem:[#allocation2] sm:$0xff]  ;;  %v41_v1 = vld [vmem:[#allocation2 + $0x8] sm:$0xff]  ;;  %v461_v11 = vmov 0.0   ;;  %v79_v13 = vlaneseq }
  0x1d   :  { %v44_v2 = vcombine.high %v40_v0, %v40_v0  ;;  %v49_v3 = vsel %vm48_vm0, %v40_v0, 0.0  ;;  %v45_v4 = vcombine.high %v41_v1, %v41_v1  ;;  %v54_v6 = vsel %vm48_vm0, %v41_v1, 0.0  ;;  %v62_v10 = vld [vmem:[#allocation5] sm:$0xf]  ;;  %355 = vmatprep.subr.mxu0 %v461_v11  ;;  %360 = vmatprep.subr.mxu1 %v461_v11  ;;  %v67_v12 = vld [vmem:[#allocation5 + $0x28] sm:$0xff]  ;;  %v65_v25 = vld [vmem:[#allocation5 + $0x18] sm:$0xff] }
  0x1e   :  { %vm462_vm1 = vmmov 0   ;;  %356 = vmatpush3.msk.msra.mxu0 %vm48_vm0, %v62_v10  ;;  %361 = vmatpush3.msra.mxu1 %v67_v12  ;;  %v80_v14 = vand.u32 127, %v79_v13  ;;  %v82_v15 = vshrl.u32 %v79_v13, 7  ;;  %vm89_vm2 = vcmask 1041409   ;;  %v66_v24 = vld [vmem:[#allocation5 + $0x20] sm:$0xff]  ;;  %v64_v26 = vld [vmem:[#allocation5 + $0x10] sm:$0xff] }
  0x1f   :  { %v50_v5 = vsel %vm48_vm0, %v44_v2, 0.0  ;;  %v55_v7 = vsel %vm48_vm0, %v45_v4, 0.0  ;;  %357 = vmatprep.mubr.msk.f32.mxu0 %vm462_vm1, %v461_v11  ;;  %368 = vmatprep.mubr.msk.f32.mxu1 %vm462_vm1, %v461_v11  ;;  %vm91_vm3 = vcmask 31744   ;;  %v72_v27 = vld [vmem:[#allocation5 + $0x50] sm:$0xff]  ;;  %v337_v28 = vld [vmem:[#allocation5 + $0x8] ss:$0 sm:$0xff] }
  0x20   :  { %v51_v8 = vadd.f32 %v50_v5, %v49_v3  ;;  %v56_v9 = vadd.f32 %v55_v7, %v54_v6  ;;  %371 = vmatprep.subr.mxu0 %v461_v11  ;;  %362 = vmatprep.subr.mxu1 %v461_v11  ;;  %v83_v17 = vsub.s32 %v80_v14, %v82_v15  ;;  %vm172_vm4 = vcmask 261120   ;;  %v71_v33 = vld [vmem:[#allocation5 + $0x48] sm:$0xff]  ;;  %v70_v34 = vld [vmem:[#allocation5 + $0x40] sm:$0xff]  ;;  %v69_v35 = vld [vmem:[#allocation5 + $0x38] sm:$0xff]  ;;  %s463_s0 = smov [#allocation7]  }
  0x21   :  { %363 = vmatpush3.msra.mxu1 %v66_v24  ;;  %v340_v36 = vld [vmem:[#allocation5 + $0x30] ss:$0 sm:$0xff]  ;;  %s327_s1 = sshll.u32 %s463_s0, 4  ;;  %s328_s1 = int_to_ptr.vmem [resolvable:$true] %s327_s1 }
  0x22   :  { %52 = vadd.xlane.f32.xlu0 %v51_v8  ;;  %364 = vmatprep.subr.mxu1 %v461_v11  ;;  %s431_s21 = scalar_lea.vmem %s328_s1, 32  ;;  %p436_p11 = scmp.lt.s32.totalorder %s328_s1, %s328_s1 }
  0x23   :  { %365 = vmatpush3.msra.mxu1 %v65_v25  ;;  %p432_p10 = scmp.ne.s32.totalorder %s328_s1, %s431_s21  ;;  %p437_p12 = scmp.lt.s32.totalorder %s431_s21, %s431_s21 }
  0x24   :  { %366 = vmatprep.subr.mxu1 %v461_v11 }
  0x25   :  { %367 = vmatpush3.msra.mxu1 %v64_v26  ;;  %p438_p13 = por %p437_p12, %p436_p11 }
  0x26   :  { %57 = vadd.xlane.f32.xlu0 %v56_v9 }
  0x27   :  { %p439_p0 = pnand %p438_p13, %p432_p10 }
  0xab   :  { %v53_v16 = vpop.xlane.xlu0 %52 }
  0xac   :  { %v60_v18 = vmul.f32 0.00390625, %v53_v16 }
  0xae   :  { %v84_v21 = vrot.slane %v60_v18, %v83_v17 }
  0xaf   :  { %v58_v19 = vpop.xlane.xlu0 %57 }
  0xb0   :  { %v61_v20 = vmul.f32 0.00390625, %v58_v19 }
  0xb2   :  { %v88_v22 = vrot.slane %v61_v20, %v83_v17 }
  0xb4   :  { %v90_v23 = vsel %vm89_vm2, %v88_v22, %v84_v21 }
  0xb5   :  { %358 = vmatmul.mubr.msk.f32.vlgmr.msra.gmra.mxu0 %vm91_vm3, %v90_v23 }
  0xb6   :  { %379 = vmatprep.mubr.msk.f32.mxu0 %vm462_vm1, %v461_v11  ;;  %372 = vmatpush3.msra.mxu0 %v72_v27 }
  0xb7   :  { %373 = vmatprep.subr.mxu0 %v461_v11 }
  0xb8   :  { %374 = vmatpush3.msra.mxu0 %v71_v33 }
  0xb9   :  { %375 = vmatprep.subr.mxu0 %v461_v11 }
  0xba   :  { %376 = vmatpush3.msra.mxu0 %v70_v34 }
  0xbb   :  { %377 = vmatprep.subr.mxu0 %v461_v11 }
  0xbc   :  { %378 = vmatpush3.msra.mxu0 %v69_v35 }
 0x175   :  { %v163_v29 = vpop.f32.mrf.mxu0 }
 0x176   :  { %v164_v30 = vadd.f32 %v337_v28, %v163_v29 }
 0x177   :  { %v359_v31 = vpop.f32.mrf.mxu0 }
 0x178   :  { %v167_v32 = vmax.f32 %v164_v30, 0.0 }
 0x17a   :  { %369 = vmatmul.mubr.msk.f32.vlgmr.msra.gmra.mxu1 %vm172_vm4, %v167_v32 }
 0x23a   :  { %v242_v37 = vpop.f32.mrf.mxu1 }
 0x23b   :  { %v243_v38 = vadd.f32 %v340_v36, %v242_v37 }
 0x23c   :  { %v370_v39 = vpop.f32.mrf.mxu1 }
 0x23d   :  { %v246_v40 = vmax.f32 %v243_v38, 0.0 }
 0x23f   :  { %380 = vmatmul.mubr.msk.f32.vlgmr.msra.gmra.mxu0 %vm172_vm4, %v246_v40 }
 0x2ff   :  { %v316_v41 = vpop.f32.mrf.mxu0 }
 0x300   :  { %320 = vst [vmem:[#allocation7] sm:$0x3] %v316_v41 }
 0x301   :  { %v381_v42 = vpop.f32.mrf.mxu0 }
 0x302   :  { %442 = shalt.err (!%p439_p0)
}
 0x303   :  { %330 = dma.vmem_to_hbm [thread:$0]  %s328_s1, 32, %s500_s2, [#allocation4]  }
 0x304   :  { %455 = dma.done.wait [#allocation4], 32  }
 0x305   :  { %456 = vsyncadd [#allocation4], 4294967264 }
 0x306   :  { %334 = vsyncpa [#allocation3], 1 }
 0x307   :  { %335 = vsyncpa [#allocation6], 1 }
 0x308   :  { %336 = vsyncpa [#allocation4], 1 }

</bundles_post_ra>
